<compile_context>
chip_gen: v6e
topology: v6e:2x2x1
jax: 0.10.0
libtpu: 0.0.40
codegen_flags: <defaults>
</compile_context>

<pallas_src>
import functools

import jax
import jax.numpy as jnp
from jax.experimental import pallas as pl
from jax.experimental.pallas import tpu as pltpu


# ---------------------------------------------------------------------------
# Generation-aware VMEM budgeting (conservative fallback = v7x, 64 MiB).
# ---------------------------------------------------------------------------
def _vmem_config():
    """Returns (vmem_limit_bytes, per-step tile budget bytes)."""
    phys = None
    try:
        phys = getattr(pltpu.get_tpu_info(), "vmem_capacity_bytes", None)
    except Exception:
        phys = None
    if phys is None:
        phys = 64 * 1024 * 1024
    if phys >= 100 * 1024 * 1024:                    # v5e / v6e: 128 MiB physical
        return 96 * 1024 * 1024, 48 * 1024 * 1024
    return 44 * 1024 * 1024, 22 * 1024 * 1024        # v7x-class: 64 MiB physical


def _sublane_pack(dtype):
    """Sublane packing multiple: 8 (32-bit), 16 (16-bit), 32 (8-bit)."""
    return max(8, 32 // jnp.dtype(dtype).itemsize)


# ---------------------------------------------------------------------------
# Kernels: pure copies, dtype promotion folded in via cast-on-store.
# ---------------------------------------------------------------------------
def _concat_lane_kernel(x_ref, f_ref, o_ref, *, k1):
    # out[:, :k1] = x ; out[:, k1:] = f    (concat boundary on the lane axis)
    o_ref[:, :k1] = x_ref[...].astype(o_ref.dtype)
    o_ref[:, k1:] = f_ref[...].astype(o_ref.dtype)


def _concat_sublane_kernel(x_ref, f_ref, o_ref, *, c1):
    # out[:, :c1, :] = x ; out[:, c1:, :] = f
    # Concat boundary on the sublane axis; inner dim stays lane-dense.
    o_ref[:, :c1, :] = x_ref[...].astype(o_ref.dtype)
    o_ref[:, c1:, :] = f_ref[...].astype(o_ref.dtype)


# ---------------------------------------------------------------------------
# Lane-aligned path: (outer, c, inner) views with inner % 128 == 0.
# ---------------------------------------------------------------------------
def _concat_inner_aligned(x3, f3, out_dtype):
    outer, c1, inner = x3.shape
    c2 = f3.shape[1]
    c_out = c1 + c2
    vmem_limit, budget = _vmem_config()
    itemsize = max(jnp.dtype(out_dtype).itemsize,
                   jnp.dtype(x3.dtype).itemsize,
                   jnp.dtype(f3.dtype).itemsize)

    # x + f + out blocks, double-buffered, per (outer-row, lane) cell.
    per_cell = 4 * c_out * itemsize
    max_lanes = budget // max(per_cell, 1)
    inner_tile = min(inner, max(128, (max_lanes // 128) * 128))
    outer_tile = min(outer, max(1, budget // max(per_cell * inner_tile, 1)))

    # Guarantee >= 2 grid steps when possible (v7x megacore, DMA/compute
    # overlap everywhere); split the outer axis first, then inner columns.
    if pl.cdiv(outer, outer_tile) * pl.cdiv(inner, inner_tile) < 2:
        if outer >= 2:
            outer_tile = max(1, outer // 2)
        elif inner >= 256:
            inner_tile = max(128, ((inner // 128) // 2) * 128)

    grid = (pl.cdiv(outer, outer_tile), pl.cdiv(inner, inner_tile))
    bytes_accessed = (x3.size * jnp.dtype(x3.dtype).itemsize
                      + f3.size * jnp.dtype(f3.dtype).itemsize
                      + outer * c_out * inner * jnp.dtype(out_dtype).itemsize)

    return pl.pallas_call(
        functools.partial(_concat_sublane_kernel, c1=c1),
        out_shape=jax.ShapeDtypeStruct((outer, c_out, inner), out_dtype),
        grid_spec=pltpu.PrefetchScalarGridSpec(
            num_scalar_prefetch=0,
            grid=grid,
            in_specs=[
                pl.BlockSpec((outer_tile, c1, inner_tile), lambda i, j: (i, 0, j)),
                pl.BlockSpec((outer_tile, c2, inner_tile), lambda i, j: (i, 0, j)),
            ],
            out_specs=pl.BlockSpec((outer_tile, c_out, inner_tile),
                                   lambda i, j: (i, 0, j)),
        ),
        compiler_params=pltpu.CompilerParams(
            dimension_semantics=("parallel", "parallel"),
            vmem_limit_bytes=vmem_limit,
        ),
        cost_estimate=pl.CostEstimate(flops=0, transcendentals=0,
                                      bytes_accessed=bytes_accessed),
    )(x3, f3)


# ---------------------------------------------------------------------------
# General fallback: flattened (rows, cols) with a ragged row-tiled grid.
# ---------------------------------------------------------------------------
def _concat_rows(x2, f2, out_dtype):
    n, k1 = x2.shape
    k2 = f2.shape[1]
    k_out = k1 + k2
    vmem_limit, budget = _vmem_config()
    itemsize = max(jnp.dtype(out_dtype).itemsize,
                   jnp.dtype(x2.dtype).itemsize,
                   jnp.dtype(f2.dtype).itemsize)
    pack = max(_sublane_pack(x2.dtype), _sublane_pack(f2.dtype),
               _sublane_pack(out_dtype))

    per_row = 4 * k_out * itemsize                   # x + f + out, double-buffered
    row_tile = budget // max(per_row, 1)
    row_tile = max(pack, (row_tile // pack) * pack)

    if row_tile >= n:
        # Everything fits in one block.  Split into >= 2 packing-aligned blocks
        # when possible so megacore / pipelining have something to overlap.
        n_blocks = pl.cdiv(n, pack)
        row_tile = pack * max(1, n_blocks // 2) if n_blocks >= 2 else n

    grid = (pl.cdiv(n, row_tile),)                   # ragged tail masked by Pallas
    bytes_accessed = (x2.size * jnp.dtype(x2.dtype).itemsize
                      + f2.size * jnp.dtype(f2.dtype).itemsize
                      + n * k_out * jnp.dtype(out_dtype).itemsize)

    return pl.pallas_call(
        functools.partial(_concat_lane_kernel, k1=k1),
        out_shape=jax.ShapeDtypeStruct((n, k_out), out_dtype),
        grid_spec=pltpu.PrefetchScalarGridSpec(
            num_scalar_prefetch=0,
            grid=grid,
            in_specs=[
                pl.BlockSpec((row_tile, k1), lambda i: (i, 0)),
                pl.BlockSpec((row_tile, k2), lambda i: (i, 0)),
            ],
            out_specs=pl.BlockSpec((row_tile, k_out), lambda i: (i, 0)),
        ),
        compiler_params=pltpu.CompilerParams(
            dimension_semantics=("parallel",),
            vmem_limit_bytes=vmem_limit,
        ),
        cost_estimate=pl.CostEstimate(flops=0, transcendentals=0,
                                      bytes_accessed=bytes_accessed),
    )(x2, f2)


def concat_pallas(x, f, dim):
    """torch.cat([x, f], dim) equivalent computed by a Pallas TPU kernel."""
    x = jnp.asarray(x)
    f = jnp.asarray(f)
    dim = dim % x.ndim
    assert x.shape[:dim] == f.shape[:dim] and x.shape[dim + 1:] == f.shape[dim + 1:], \
        "all non-concat dims must match"
    out_dtype = jnp.promote_types(x.dtype, f.dtype)

    outer = 1
    for s in x.shape[:dim]:
        outer *= s
    inner = 1
    for s in x.shape[dim + 1:]:
        inner *= s
    c1, c2 = x.shape[dim], f.shape[dim]
    out_shape = x.shape[:dim] + (c1 + c2,) + x.shape[dim + 1:]

    if inner >= 128 and inner % 128 == 0:
        out3 = _concat_inner_aligned(x.reshape(outer, c1, inner),
                                     f.reshape(outer, c2, inner), out_dtype)
        return out3.reshape(out_shape)
    out2 = _concat_rows(x.reshape(outer, c1 * inner),
                        f.reshape(outer, c2 * inner), out_dtype)
    return out2.reshape(out_shape)


class ConcatPallas:
    """JAX mirror of the PyTorch Concat module (list bookkeeping in Python)."""

    def __init__(self, idx=-1, dim=1, replace=False, pop=False, inplace=False,
                 init_features=None):
        self.idx = idx
        self.dim = dim
        self.replace = replace
        self.pop = pop
        self.inplace = inplace
        self.features = list(init_features) if init_features is not None else []

    def __call__(self, x, features=None):
        if self.inplace:
            features = self.features
        elif features is None:
            features = []
        x = concat_pallas(x, features[self.idx], self.dim)
        if self.replace:
            features[self.idx] = x
        if self.pop:
            features.pop(self.idx)
        if self.inplace:
            return x
        return x, features


if __name__ == "__main__":
    key = jax.random.PRNGKey(0)
    kx, ka, kb, kc, kd = jax.random.split(key, 5)

    ok = True

    def check(got, want, name):
        global ok
        got = jax.block_until_ready(got)
        want = jax.block_until_ready(want)
        if got.shape != want.shape or got.dtype != want.dtype \
                or not bool(jnp.array_equal(got, want)):
            ok = False
            print(f"MISMATCH {name}: got {got.shape}/{got.dtype}, "
                  f"want {want.shape}/{want.dtype}")

    # NCHW: batch=2, channels=4, spatial=16x16 (inner = 256 -> lane-aligned path)
    x = jax.random.normal(kx, (2, 4, 16, 16), dtype=jnp.float32)
    f_a = jax.random.normal(ka, (2, 4, 16, 16), dtype=jnp.float32)
    f_b = jax.random.normal(kb, (2, 2, 16, 16), dtype=jnp.float32)

    # 1) default: idx=-1, dim=1 -> (cat(x, features[-1]), features unchanged)
    m = ConcatPallas(idx=-1, dim=1)
    y, feats = m(x, [f_a, f_b])
    check(y, jnp.concatenate([x, f_b], axis=1), "default idx=-1 dim=1")
    ok = ok and len(feats) == 2

    # 2) idx=0 with replace=True: features[0] is overwritten with the concat.
    m = ConcatPallas(idx=0, dim=1, replace=True)
    y, feats = m(x, [f_a, f_b])
    want2 = jnp.concatenate([x, f_a], axis=1)
    check(y, want2, "idx=0 replace")
    check(feats[0], want2, "replaced feature")

    # 3) inplace=True with pop=True and stored init_features.
    m = ConcatPallas(idx=-1, dim=1, pop=True, inplace=True,
                     init_features=[f_a, f_b])
    y = m(x)
    check(y, jnp.concatenate([x, f_b], axis=1), "inplace pop")
    ok = ok and len(m.features) == 1

    # 4) mixed dtypes (bf16 feature) -> cast-on-store inside the kernel.
    f_bf = f_b.astype(jnp.bfloat16)
    y = concat_pallas(x, f_bf, 1)
    check(y, jnp.concatenate([x, f_bf.astype(jnp.float32)], axis=1),
          "mixed dtype promotion")

    # 5) concat on the last axis (inner = 1 -> flattened-row path).
    xl = jax.random.normal(kc, (2, 4, 16, 16), dtype=jnp.float32)
    fl = jax.random.normal(kd, (2, 4, 16, 8), dtype=jnp.float32)
    y = concat_pallas(xl, fl, -1)
    check(y, jnp.concatenate([xl, fl], axis=-1), "last-dim concat")

    # 6) concat on dim 0 (outer = 1 -> inner column split keeps grid >= 2).
    xs = jax.random.normal(kc, (4, 256), dtype=jnp.float32)
    fs = jax.random.normal(kd, (2, 256), dtype=jnp.float32)
    y = concat_pallas(xs, fs, 0)
    check(y, jnp.concatenate([xs, fs], axis=0), "dim-0 concat")

    # 7) ragged row count (20 rows, tile 8 -> masked tail block, no host pad).
    xr = jax.random.normal(kc, (20, 6), dtype=jnp.float32)
    fr = jax.random.normal(kd, (20, 10), dtype=jnp.float32)
    y = concat_pallas(xr, fr, 1)
    check(y, jnp.concatenate([xr, fr], axis=1), "ragged rows")

    if ok:
        print("KERNEL_OK")
</pallas_src>

<mosaic_0001>
module attributes {stable_mosaic.version = 11 : i64} {
  func.func @_concat_sublane_kernel(%arg0: i32, %arg1: i32, %arg2: memref<1x4x256xf32, #tpu.memory_space<vmem>>, %arg3: memref<1x2x256xf32, #tpu.memory_space<vmem>>, %arg4: memref<1x6x256xf32, #tpu.memory_space<vmem>>) attributes {dimension_semantics = [#tpu.dimension_semantics<parallel>, #tpu.dimension_semantics<parallel>], iteration_bounds = array<i64: 2, 1>, scalar_prefetch = 0 : i64, scratch_operands = 0 : i64, tpu.core_type = #tpu.core_type<tc>, window_params = [{transform_indices = @transform_0, window_bounds = array<i64: 1, 4, 256>}, {transform_indices = @transform_1, window_bounds = array<i64: 1, 2, 256>}, {transform_indices = @transform_2, window_bounds = array<i64: 1, 6, 256>}]} {
    %c0 = arith.constant 0 : index
    %c0_0 = arith.constant 0 : index
    %c0_1 = arith.constant 0 : index
    %0 = vector.load %arg2[%c0, %c0_0, %c0_1] : memref<1x4x256xf32, #tpu.memory_space<vmem>>, vector<1x4x256xf32>
    %c0_2 = arith.constant 0 : index
    %c0_3 = arith.constant 0 : index
    %c0_4 = arith.constant 0 : index
    %1 = vector.load %arg4[%c0_2, %c0_3, %c0_4] : memref<1x6x256xf32, #tpu.memory_space<vmem>>, vector<1x4x256xf32>
    tpu.vector_store %arg4[%c0_2, %c0_3, %c0_4], %0 {strides = array<i32>} : memref<1x6x256xf32, #tpu.memory_space<vmem>>, vector<1x4x256xf32>,
    %c0_5 = arith.constant 0 : index
    %c0_6 = arith.constant 0 : index
    %c0_7 = arith.constant 0 : index
    %2 = vector.load %arg3[%c0_5, %c0_6, %c0_7] : memref<1x2x256xf32, #tpu.memory_space<vmem>>, vector<1x2x256xf32>
    %c0_8 = arith.constant 0 : index
    %c4 = arith.constant 4 : index
    %c0_9 = arith.constant 0 : index
    %3 = vector.load %arg4[%c0_8, %c4, %c0_9] : memref<1x6x256xf32, #tpu.memory_space<vmem>>, vector<1x2x256xf32>
    tpu.vector_store %arg4[%c0_8, %c4, %c0_9], %2 {strides = array<i32>} : memref<1x6x256xf32, #tpu.memory_space<vmem>>, vector<1x2x256xf32>,
    return
  }
  func.func @transform_0(%arg0: i32, %arg1: i32) -> (i32, i32, i32) {
    %c0_i32 = arith.constant 0 : i32
    %c0_i32_0 = arith.constant 0 : i32
    return %arg0, %c0_i32, %arg1 : i32, i32, i32
  }
  func.func @transform_1(%arg0: i32, %arg1: i32) -> (i32, i32, i32) {
    %c0_i32 = arith.constant 0 : i32
    %c0_i32_0 = arith.constant 0 : i32
    return %arg0, %c0_i32, %arg1 : i32, i32, i32
  }
  func.func @transform_2(%arg0: i32, %arg1: i32) -> (i32, i32, i32) {
    %c0_i32 = arith.constant 0 : i32
    %c0_i32_0 = arith.constant 0 : i32
    return %arg0, %c0_i32, %arg1 : i32, i32, i32
  }
}

</mosaic_0001>

<bundles_post_ra>
// kernel: tpu_custom_call.1
= control target key start
LH: loop header
LB: loop body
LE: loop exit
PB: predicated region body
PF: predicated region fallthrough
CT: control target
= control target key end

     0   :  { %7 = vsyncpa [#allocation3], 0  ;;  %s713_s0 = inlined_call_operand.hbm [shape: f32[2,4,256], index: 0, kind: input, shape index: {}]   ;;  %s714_s1 = inlined_call_operand.hbm [shape: f32[2,2,256], index: 1, kind: input, shape index: {}]   ;;  %s715_s2 = inlined_call_operand.vmem [shape: f32[2,6,256], index: 2, kind: output, shape index: {}]  }
   0x1   :  { %9 = vsyncpa [#allocation3 + $0x1], 0 }
   0x2   :  { %10 = vsyncpa [#allocation5], 0 }
   0x3   :  { %12 = vsyncpa [#allocation5 + $0x1], 0  ;;  %s585_s9 = smov 0   ;;  %s587_s10 = smov 0  }
   0x4   :  { %s589_s11 = smov 0   ;;  %s591_s12 = smov 0  }
   0x5   :  { %s593_s13 = smov 0   ;;  %s595_s14 = smov 0  }
   0x6 LB: > { %s374_s15 = sadd.s32 4294967295, %s566_s14   ;;  %s30_s16 = sadd.s32 1, %s562_s13  ;;  %s566_s14 = sphi %s595_s14, %s18_s14   ;;  %s562_s13 = sphi %s593_s13, %s724_s13   ;;  %s558_s12 = sphi %s591_s12, %s723_s12   ;;  %s554_s11 = sphi %s589_s11, %s722_s11   ;;  %s550_s10 = sphi %s587_s10, %s721_s10   ;;  %s546_s9 = sphi %s585_s9, %s720_s9  }
   0x7   : > { %p32_p0 = scmp.ge.s32.totalorder %s30_s16, 2  ;;  %s39_s17 = sadd.s32 1, %s554_s11 }
   0x8   : > { %p46_p1 = scmp.ne.s32.totalorder %s554_s11, %s550_s10  ;;  %p47_p2 = scmp.eq.s32.totalorder %s566_s14, 0 }
   0x9   : > { %s726_s16 = smov (%p32_p0, %s30_s16), 0  ;;  %p52_p4 = scmp.ne.s32.totalorder %s550_s10, %s546_s9 }
   0xa   : > { %p621_p3 = por %p47_p2, %p46_p1  ;;  %s34_s19 = ssub.s32 %s562_s13, %s726_s16 }
   0xb   : > { %p53_p5 = scmp.eq.s32.totalorder %s374_s15, 0  ;;  %p37_p6 = scmp.eq.s32.totalorder %s34_s19, 0 }
   0xc   : > { %p406_p8 = scmp.lt.s32.totalorder %s566_s14, 2  ;;  %s637_s22 = sand.u32 1, %s554_s11  }
   0xd   : > { %p628_p7 = por %p53_p5, %p52_p4  ;;  %s392_s23 = sshll.u32 %s562_s13, 7 }
   0xe   : > { %s634_s21 = scalar_select %p37_p6, %s554_s11, %s39_s17  }
   0xf   : > { %s378_s24 = sshll.u32 %s637_s22, 3  ;;  %s144_s27 = scalar_lea.hbm %s713_s0, %s392_s23 }
  0x10   : > { %s136_s28 = scalar_lea.vmem [#allocation2], %s378_s24  ;;  %p646_p9 = pnand %p406_p8, %p621_p3 }
  0x11   : > { %s146_s29 = sshll.u32 %s136_s28, 4  ;;  %p384_p10 = scmp.ge.s32.totalorder %s566_s14, 1  ;;  %s147_s29 = int_to_ptr.vmem [resolvable:$true] %s146_s29 }
  0x12   : > { %p172_p11 = scmp.lt.s32.totalorder %s566_s14, 3  ;;  %s133_s3 = scalar_lea.sflag [#allocation3], %s637_s22 }
  0x13   : > { %p458_p12 = pneg %p646_p9  ;;  %s469_s4 = scalar_lea.vmem %s147_s29, 128 }
  0x14   : > { %p470_p13 = scmp.ne.s32.totalorder %s147_s29, %s469_s4  ;;  %s568_s5 = smov [#allocation2]  }
  0x15   : > { %s474_s6 = sshll.u32 %s568_s5, 4  ;;  %s475_s6 = int_to_ptr.vmem [resolvable:$false] %s474_s6 }
  0x16   : > { %p472_p0 = pnand %p470_p13, %p458_p12  ;;  %s476_s7 = scalar_lea.vmem %s475_s6, 256 }
  0x17   : > { %p477_p2 = scmp.lt.s32.totalorder %s147_s29, %s475_s6  ;;  %p478_p3 = scmp.lt.s32.totalorder %s476_s7, %s469_s4 }
  0x18   : > { %p473_p1 = pneg %p472_p0 }
  0x19   : > { %p479_p4 = por %p478_p3, %p477_p2 }
  0x1b   : > { %p480_p5 = pnand %p479_p4, %p473_p1 }
  0x1d   : > { %483 = shalt.err (!%p480_p5)
}
  0x1e   : > { %402 = dma.hbm_to_vmem [thread:$0]  (!%p646_p9), %s144_s27, 128, %s147_s29, %s133_s3  }
  0x1f   : > { %p664_p6 = pnand %p384_p10, %p172_p11  ;;  %s381_s9 = sshll.u32 %s637_s22, 2 }
  0x20   : > { %s393_s15 = sshll.u32 %s562_s13, 6  ;;  %s157_s23 = scalar_lea.vmem [#allocation4], %s381_s9 }
  0x21   : > { %s165_s19 = scalar_lea.hbm %s714_s1, %s393_s15  ;;  %s167_s24 = sshll.u32 %s157_s23, 4  ;;  %s168_s24 = int_to_ptr.vmem [resolvable:$true] %s167_s24 }
  0x22   : > { %s154_s25 = scalar_lea.sflag [#allocation5], %s637_s22  ;;  %s497_s26 = scalar_lea.vmem %s168_s24, 64 }
  0x23   : > { %p498_p8 = scmp.ne.s32.totalorder %s168_s24, %s497_s26  ;;  %s569_s27 = smov [#allocation4]  }
  0x24   : > { %s502_s28 = sshll.u32 %s569_s27, 4  ;;  %s503_s28 = int_to_ptr.vmem [resolvable:$false] %s502_s28 }
  0x25   : > { %p500_p13 = pnand %p498_p8, %p458_p12  ;;  %s504_s29 = scalar_lea.vmem %s503_s28, 128 }
  0x26   : > { %p505_p10 = scmp.lt.s32.totalorder %s168_s24, %s503_s28  ;;  %p506_p11 = scmp.lt.s32.totalorder %s504_s29, %s497_s26 }
  0x27   : > { %p501_p0 = pneg %p500_p13 }
  0x28   : > { %p507_p1 = por %p506_p11, %p505_p10 }
  0x2a   : > { %p508_p2 = pnand %p507_p1, %p501_p0 }
  0x2c   : > { %511 = shalt.err (!%p508_p2)
}
  0x2d   : > { %405 = dma.hbm_to_vmem [thread:$0]  (!%p646_p9), %s165_s19, 64, %s168_s24, %s154_s25  }
  0x2e   : > { %176 = sbr.rel (%p664_p6) target bundleno = 62 (0x3e), region = 28  ;;  %s178_s22 = sand.u32 (!%p664_p6), 1, %s550_s10  }
  0x2f   : > { %s385_s3 = sshll.u32 (!%p664_p6), %s178_s22, 3  ;;  %s179_s4 = scalar_lea.sflag (!%p664_p6), [#allocation3], %s178_s22 }
  0x30   : > { %s182_s5 = scalar_lea.vmem (!%p664_p6), [#allocation2], %s385_s3 }
  0x33   : > { %537 = dma.done.wait (%p628_p7), %s179_s4, 128  }
  0x34   : > { %539 = vsyncadd (%p628_p7), %s179_s4, 4294967168  ;;  %s386_s6 = sshll.u32 %s178_s22, 2  ;;  %s188_s7 = scalar_lea.sflag [#allocation5], %s178_s22 }
  0x35   : > { %s191_s9 = scalar_lea.vmem [#allocation4], %s386_s6 }
  0x36   : > { %541 = dma.done.wait (%p628_p7), %s188_s7, 64  }
  0x37   : > { %543 = vsyncadd (%p628_p7), %s188_s7, 4294967232  ;;  %p224_p9 = scmp.lt.s32.totalorder %s558_s12, 1  ;;  %v233_v0 = vld [vmem:[%s182_s5] sm:$0xff] }
  0x38   : > { %v389_v1 = vld.sshfl [vmem:[%s191_s9] sm:$0x33 pattern:$0x76325410]  ;;  %v235_v2 = vcombine.high %v233_v0, %v233_v0 }
  0x39   : > { %s728_s12 = smov (!%p224_p9, %s558_s12), 1  ;;  %v248_v3 = vcombine.low %v389_v1, %v389_v1 }
  0x3a   : > { %s394_s30 = sshll.u32 %s728_s12, 4 }
  0x3b   : > { %s231_s17 = scalar_lea.vmem %s715_s2, %s394_s30 }
  0x3c   : > { %237 = vst [vmem:[%s231_s17] sm:$0xf] %v233_v0  ;;  %252 = vst [vmem:[%s231_s17 + $0x8] sm:$0x30] %v389_v1 }
  0x3d   : > { %238 = vst [vmem:[%s231_s17 + $0x8] sm:$0xf] %v235_v2  ;;  %251 = vst [vmem:[%s231_s17] sm:$0x30] %v248_v3 }
  0x3e PF: > { %s18_s14 = sadd.s32 1, %s566_s14   ;;  %s720_s9 = smov %s550_s10 }
  0x3f   : > { %p15_p7 = scmp.ge.s32.totalorder %s18_s14, 4   ;;  %s721_s10 = smov %s554_s11 }
  0x40   : > { %s722_s11 = smov %s634_s21  ;;  %s723_s12 = smov %s562_s13 }
  0x41   : > { %s724_s13 = smov %s726_s16  ;;  %17 = sbr.rel (!%p15_p7) target bundleno = 6 (0x6), region = 81 }
  0x46   :  { %283 = vsyncpa [#allocation3], 1 }
  0x47   :  { %285 = vsyncpa [#allocation3 + $0x1], 1 }
  0x48   :  { %286 = vsyncpa [#allocation5], 1 }
  0x49   :  { %288 = vsyncpa [#allocation5 + $0x1], 1 }

</bundles_post_ra>
